<compile_context>
chip_gen: v5e
topology: v5e:2x2
jax: 0.10.0
libtpu: 0.0.40
codegen_flags: <defaults>
</compile_context>

<pallas_src>
import functools
from typing import NamedTuple

import jax
import jax.numpy as jnp
from jax.experimental import pallas as pl
from jax.experimental.pallas import tpu as pltpu


class SEMeta(NamedTuple):
    d: int    # N + M (input features)
    u0: int   # first hidden width
    u1: int   # second hidden width
    n: int    # output width (dim_state)
    r1: int   # sublane-padded row offset of W2 block in the packed buffer
    r2: int   # sublane-padded row extent of W2 block


# ----------------------------------------------------------------------------
# Kernel: whole arrays resident in VMEM, 3 MXU matmuls, no grid.
# ----------------------------------------------------------------------------
def _nlc_se_kernel(x_ref, u_ref, w_ref, out_ref, *, d, u0, u1, n, r1, r2):
    # feat = [x | u]  (lane-offset write of u; off the MXU critical chain)
    feat = jnp.concatenate([x_ref[...], u_ref[...]], axis=1)          # (B, d)

    # Layer 1: h1 = relu(feat @ W1^T)
    w1 = w_ref[0:d, 0:u0]                                             # (d, u0)
    h = jnp.maximum(jnp.dot(feat, w1, preferred_element_type=jnp.float32), 0.0)

    # Layer 2: h2 = relu(h1 @ W2^T)
    w2 = w_ref[r1:r1 + u0, 0:u1]                                      # (u0, u1)
    h = jnp.maximum(jnp.dot(h, w2, preferred_element_type=jnp.float32), 0.0)

    # Layer 3 + skip fused along K: out = [h2 | feat] @ [W3^T ; W_ssl^T]
    w3_skip = w_ref[r1 + r2:r1 + r2 + u1 + d, 0:n]                    # (u1+d, n)
    hs = jnp.concatenate([h, feat], axis=1)                           # (B, u1+d)
    out_ref[...] = jnp.dot(hs, w3_skip, preferred_element_type=jnp.float32)


# ----------------------------------------------------------------------------
# One-time (init-time) parameter repack. NOT on the forward hot path.
# Weights come in PyTorch Linear convention (out_features, in_features).
# ----------------------------------------------------------------------------
def prepare_params(w_ssl, w1, w2, w3):
    w_ssl_t = jnp.asarray(w_ssl, jnp.float32).T   # (d, n)
    w1_t = jnp.asarray(w1, jnp.float32).T         # (d, u0)
    w2_t = jnp.asarray(w2, jnp.float32).T         # (u0, u1)
    w3_t = jnp.asarray(w3, jnp.float32).T         # (u1, n)

    d, u0 = w1_t.shape
    u1, n = w3_t.shape

    # Fuse the final MLP layer with the ssl skip along the contraction axis.
    w3_skip = jnp.concatenate([w3_t, w_ssl_t], axis=0)   # (u1 + d, n)

    # Pack everything into a single sublane(8)-aligned 2D buffer.
    def rpad8(r):
        return ((r + 7) // 8) * 8

    r1 = rpad8(d)          # start row of W2 block
    r2 = rpad8(u0)         # row extent of W2 block (W3_skip starts at r1 + r2)
    r3 = rpad8(u1 + d)
    cols = max(u0, u1, n)

    packed = jnp.zeros((r1 + r2 + r3, cols), jnp.float32)
    packed = packed.at[0:d, 0:u0].set(w1_t)
    packed = packed.at[r1:r1 + u0, 0:u1].set(w2_t)
    packed = packed.at[r1 + r2:r1 + r2 + u1 + d, 0:n].set(w3_skip)

    meta = SEMeta(d=d, u0=u0, u1=u1, n=n, r1=r1, r2=r2)
    return packed, meta


# ----------------------------------------------------------------------------
# Forward wrapper: no layout glue, a single un-pipelined pallas_call.
# ----------------------------------------------------------------------------
@functools.partial(jax.jit, static_argnames=("meta",))
def nlc_system_estimator_forward(x, u, packed_w, meta):
    x = x.astype(jnp.float32)
    u = u.astype(jnp.float32)
    b = x.shape[0]

    flops = 2 * b * (meta.d * meta.u0
                     + meta.u0 * meta.u1
                     + (meta.u1 + meta.d) * meta.n)
    bytes_accessed = 4 * (x.size + u.size + packed_w.size + b * meta.n)

    vmem = pl.BlockSpec(memory_space=pltpu.MemorySpace.VMEM)
    kernel = functools.partial(_nlc_se_kernel, d=meta.d, u0=meta.u0,
                               u1=meta.u1, n=meta.n, r1=meta.r1, r2=meta.r2)
    return pl.pallas_call(
        kernel,
        out_shape=jax.ShapeDtypeStruct((b, meta.n), jnp.float32),
        in_specs=[vmem, vmem, vmem],
        out_specs=vmem,
        cost_estimate=pl.CostEstimate(
            flops=flops, transcendentals=0, bytes_accessed=bytes_accessed),
    )(x, u, packed_w)


def _reference_forward(x, u, w_ssl, w1, w2, w3):
    feat = jnp.concatenate([x, u], axis=1)
    feat_ssl = feat @ w_ssl.T
    h = jnp.maximum(feat @ w1.T, 0.0)
    h = jnp.maximum(h @ w2.T, 0.0)
    feat_nlc = h @ w3.T
    return feat_ssl + feat_nlc


if __name__ == "__main__":
    # Module config: dim_state N, dim_action M, hidden units (u0, u1)
    N, M = 4, 2
    units = (32, 32)
    B = 8

    key = jax.random.PRNGKey(0)
    kx, ku, ks, k1, k2, k3 = jax.random.split(key, 6)

    x = jax.random.normal(kx, (B, N), dtype=jnp.float32)
    u = jax.random.normal(ku, (B, M), dtype=jnp.float32)

    # Deterministic synthetic weights (PyTorch Linear convention: (out, in)).
    w_ssl = 0.05 * jax.random.normal(ks, (N, N + M), dtype=jnp.float32)
    w1 = 0.01 * jax.random.normal(k1, (units[0], N + M), dtype=jnp.float32)
    w2 = 0.01 * jax.random.normal(k2, (units[1], units[0]), dtype=jnp.float32)
    w3 = 0.05 * jax.random.normal(k3, (N, units[1]), dtype=jnp.float32)

    # One-time repack (init-time), then the hot-path forward call.
    packed_w, meta = prepare_params(w_ssl, w1, w2, w3)
    packed_w = jax.block_until_ready(packed_w)

    out = nlc_system_estimator_forward(x, u, packed_w, meta)
    out = jax.block_until_ready(out)

    ref = _reference_forward(x, u, w_ssl, w1, w2, w3)
    assert out.shape == (B, N)
    assert jnp.allclose(out, ref, atol=1e-5, rtol=1e-5), "mismatch vs reference"

    print("KERNEL_OK")
</pallas_src>

<mosaic_0001>
module attributes {stable_mosaic.version = 11 : i64} {
  func.func @_nlc_se_kernel(%arg0: memref<8x4xf32, #tpu.memory_space<vmem>>, %arg1: memref<8x2xf32, #tpu.memory_space<vmem>>, %arg2: memref<80x32xf32, #tpu.memory_space<vmem>>, %arg3: memref<8x4xf32, #tpu.memory_space<vmem>>) attributes {dimension_semantics = [], scalar_prefetch = 0 : i64, scratch_operands = 0 : i64, tpu.core_type = #tpu.core_type<tc>} {
    %c0 = arith.constant 0 : index
    %c0_0 = arith.constant 0 : index
    %0 = vector.load %arg0[%c0, %c0_0] : memref<8x4xf32, #tpu.memory_space<vmem>>, vector<8x4xf32>
    %c0_1 = arith.constant 0 : index
    %c0_2 = arith.constant 0 : index
    %1 = vector.load %arg1[%c0_1, %c0_2] : memref<8x2xf32, #tpu.memory_space<vmem>>, vector<8x2xf32>
    %2 = tpu.concatenate %0, %1 in 1 : vector<8x4xf32>, vector<8x2xf32> -> vector<8x6xf32>
    %c0_3 = arith.constant 0 : index
    %c0_4 = arith.constant 0 : index
    %3 = vector.load %arg2[%c0_3, %c0_4] : memref<80x32xf32, #tpu.memory_space<vmem>>, vector<6x32xf32>
    %cst = arith.constant dense<0.000000e+00> : vector<8x32xf32>
    %4 = tpu.matmul %2, %3, %cst {dimension_numbers = #tpu.dot_dimension_numbers<[1], [0], [0], [1], [0, 0, 1, 1], [], []>} : vector<8x6xf32>, vector<6x32xf32>, vector<8x32xf32> -> vector<8x32xf32>
    %cst_5 = arith.constant 0.000000e+00 : f32
    %5 = vector.broadcast %cst_5 : f32 to vector<8x32xf32>
    %6 = arith.maximumf %4, %5 : vector<8x32xf32>
    %c8 = arith.constant 8 : index
    %c0_6 = arith.constant 0 : index
    %7 = vector.load %arg2[%c8, %c0_6] : memref<80x32xf32, #tpu.memory_space<vmem>>, vector<32x32xf32>
    %cst_7 = arith.constant dense<0.000000e+00> : vector<8x32xf32>
    %8 = tpu.matmul %6, %7, %cst_7 {dimension_numbers = #tpu.dot_dimension_numbers<[1], [0], [0], [1], [0, 0, 1, 1], [], []>} : vector<8x32xf32>, vector<32x32xf32>, vector<8x32xf32> -> vector<8x32xf32>
    %cst_8 = arith.constant 0.000000e+00 : f32
    %9 = vector.broadcast %cst_8 : f32 to vector<8x32xf32>
    %10 = arith.maximumf %8, %9 : vector<8x32xf32>
    %c40 = arith.constant 40 : index
    %c0_9 = arith.constant 0 : index
    %11 = vector.load %arg2[%c40, %c0_9] : memref<80x32xf32, #tpu.memory_space<vmem>>, vector<38x4xf32>
    %12 = tpu.concatenate %10, %2 in 1 : vector<8x32xf32>, vector<8x6xf32> -> vector<8x38xf32>
    %cst_10 = arith.constant dense<0.000000e+00> : vector<8x4xf32>
    %13 = tpu.matmul %12, %11, %cst_10 {dimension_numbers = #tpu.dot_dimension_numbers<[1], [0], [0], [1], [0, 0, 1, 1], [], []>} : vector<8x38xf32>, vector<38x4xf32>, vector<8x4xf32> -> vector<8x4xf32>
    %c0_11 = arith.constant 0 : index
    %c0_12 = arith.constant 0 : index
    %14 = vector.load %arg3[%c0_11, %c0_12] : memref<8x4xf32, #tpu.memory_space<vmem>>, vector<8x4xf32>
    tpu.vector_store %arg3[%c0_11, %c0_12], %13 {strides = array<i32>} : memref<8x4xf32, #tpu.memory_space<vmem>>, vector<8x4xf32>,
    return
  }
}

</mosaic_0001>

<bundles_post_ra>
// kernel: nlc_system_estimator_forward.1
= control target key start
LH: loop header
LB: loop body
LE: loop exit
PB: predicated region body
PF: predicated region fallthrough
CT: control target
= control target key end

     0   :  { %s129_s14 = smov 4   ;;  %vm27_vm0 = vcmask 1045504   ;;  %vm20_vm1 = vcmask 31744   ;;  %vm23_vm2 = vcmask 48128   ;;  %s130_s19 = smov 32   ;;  %vm56_vm3 = vcmask 261120   ;;  %s194_s1 = inlined_call_operand.vmem [shape: f32[8,2], index: 1, kind: input, shape index: {}]   ;;  %s195_s2 = inlined_call_operand.vmem [shape: f32[80,32], index: 2, kind: input, shape index: {}]   ;;  %s196_s0 = inlined_call_operand.vmem [shape: f32[8,4], index: 0, kind: input, shape index: {}]   ;;  %s197_s3 = inlined_call_operand.vmem [shape: f32[8,4], index: 3, kind: output, shape index: {}]  }
   0x1   :  { %v15_v0 = vld [vmem:[%s194_s1] sm:$0xff]  ;;  %v54_v6 = vld [vmem:[%s195_s2 + $0x18] sm:$0xff]  ;;  %v53_v7 = vld [vmem:[%s195_s2 + $0x10] sm:$0xff]  ;;  %vm90_vm4 = vcmask 310272  }
   0x2   :  { %17 = vrot.lane.b32.xlu0 %v15_v0, %s129_s14  ;;  %v22_v1 = vld [vmem:[%s195_s2] sm:$0x3f]  ;;  %v52_v8 = vld [vmem:[%s195_s2 + $0x8] sm:$0xff]  ;;  %v83_v11 = vld [vmem:[%s195_s2 + $0x38] sm:$0xff] }
   0x3   :  { %122 = vmatpush.msk.msra.mxu0 %vm27_vm0, %v22_v1  ;;  %v14_v2 = vld [vmem:[%s196_s0] sm:$0xff]  ;;  %v85_v9 = vld [vmem:[%s195_s2 + $0x48] sm:$0x3f]  ;;  %v82_v14 = vld [vmem:[%s195_s2 + $0x30] sm:$0xff] }
   0x4   :  { %v55_v5 = vld [vmem:[%s195_s2 + $0x20] sm:$0xff]  ;;  %125 = vmatpush.msk.msra.mxu2 %vm27_vm0, %v85_v9  ;;  %v81_v15 = vld [vmem:[%s195_s2 + $0x28] sm:$0xff] }
   0x5   :  { %72 = vmatpush.msra.mxu1 %v55_v5  ;;  %v84_v10 = vld [vmem:[%s195_s2 + $0x40] sm:$0xff] }
   0x6   :  { %109 = vmatpush.msra.mxu2 %v84_v10 }
   0x7   :  { %73 = vmatpush.msra.mxu1 %v54_v6 }
   0x8   :  { %110 = vmatpush.msra.mxu2 %v83_v11 }
   0x9   :  { %74 = vmatpush.msra.mxu1 %v53_v7 }
   0xa   :  { %111 = vmatpush.msra.mxu2 %v82_v14 }
   0xb   :  { %75 = vmatpush.msra.mxu1 %v52_v8 }
   0xc   :  { %112 = vmatpush.msra.mxu2 %v81_v15 }
  0x74   :  { %v18_v3 = vpop.permute.xlu0 %17 }
  0x75   :  { %v21_v4 = vsel %vm20_vm1, %v14_v2, %v18_v3 }
  0x76   :  { %86 = vrot.lane.b32.xlu0 %v21_v4, %s130_s19  ;;  %123 = vmatmul.msk.f32.vlgmr.msra.gmra.mxu0 %vm23_vm2, %v21_v4 }
  0xe8   :  { %v87_v18 = vpop.permute.xlu0 %86 }
  0xf3   :  { %v48_v12 = vpop.f32.mrf.mxu0 }
  0xf4   :  { %v51_v13 = vmax.f32 %v48_v12, 0.0 }
  0xf6   :  { %124 = vmatmul.msk.f32.vlgmr.msra.gmra.mxu1 %vm56_vm3, %v51_v13 }
 0x173   :  { %v77_v16 = vpop.f32.mrf.mxu1 }
 0x174   :  { %v80_v17 = vmax.f32 %v77_v16, 0.0 }
 0x176   :  { %v89_v19 = vsel %vm56_vm3, %v80_v17, %v87_v18 }
 0x177   :  { %126 = vmatmul.msk.f32.vlgmr.msra.gmra.mxu2 %vm90_vm4, %v89_v19 }
 0x1fa   :  { %v114_v20 = vpop.f32.mrf.mxu2 }
 0x1fb   :  { %117 = vst.msk [vmem:[%s197_s3] sm:$0xff] %vm20_vm1, %v114_v20 }

</bundles_post_ra>
